<compile_context>
chip_gen: v5e
topology: v5e:2x2
jax: 0.10.0
libtpu: 0.0.40
codegen_flags: <defaults>
</compile_context>

<pallas_src>
import numpy as np

import jax
import jax.numpy as jnp
from jax.experimental import pallas as pl
from jax.experimental.pallas import tpu as pltpu

BN_EPS = 1e-5
X_DTYPE = jnp.bfloat16     # streamed input activations (use float32 on v5e / parity runs)
W_DTYPE = jnp.bfloat16     # folded weights (MXU operands, f32 accumulation)
OUT_DTYPE = jnp.float32    # final kernel output (parity with the f32 torch reference)


# -----------------------------------------------------------------------------
# helpers
# -----------------------------------------------------------------------------
def _round_up(n, m):
    return ((n + m - 1) // m) * m


def _pick_tn(n_padded, max_tn=4096):
    """Largest lane tile (multiple of 128, <= max_tn) dividing the padded point axis,
    preferring a choice that leaves >= 2 grid steps (v7x has 2 TensorCores)."""
    cap = min(n_padded, max_tn)
    divs = [t for t in range(128, cap + 1, 128) if n_padded % t == 0]
    pref = [t for t in divs if n_padded // t >= 2]
    return max(pref) if pref else max(divs)


# -----------------------------------------------------------------------------
# Fused kernel: Linear1Layer + PosE_Geo + block_num x Linear2Layer per lane tile.
# All biases are folded into weight columns via a constant-one channel row
# (row index `one_row` == out_dim) carried through the activation.
# -----------------------------------------------------------------------------
def _make_chain_kernel(n_blocks, out_dim, one_row):
    def kernel(*refs):
        x_ref, d_ref, w1_ref = refs[0], refs[1], refs[2]
        blk_refs = refs[3:3 + 2 * n_blocks]
        o_ref = refs[3 + 2 * n_blocks]

        # Linear1Layer: 1x1 conv + eval BN folded into w1 (bias rides on x's ones row).
        y = jnp.dot(w1_ref[...], x_ref[...], preferred_element_type=jnp.float32)
        y = jnp.maximum(y, 0.0)

        # PosE_Geo weighting: exp(-dist / (2*sigma^2)), sigma = 1  (EUP op, ~free).
        y = y * jnp.exp(d_ref[...] * (-0.5))

        # Re-establish the constant-one channel row that carries the folded biases of
        # every Linear2Layer block (padding rows stay exactly 0).
        rows = jax.lax.broadcasted_iota(jnp.int32, y.shape, 0)
        y = jnp.where(rows == one_row, 1.0, y)

        # Linear2Layer residual blocks — half-width intermediate and residual stay
        # on-chip, all accumulation / epilogue in f32.
        for b in range(n_blocks):
            wa = blk_refs[2 * b][...]       # (Hp, Mp): conv1+BN folded (+b1 column)
            wb = blk_refs[2 * b + 1][...]   # (Mp, Hp): conv2+BN folded (+b2 column)
            h = jnp.dot(wa, y.astype(wa.dtype), preferred_element_type=jnp.float32)
            h = jnp.maximum(h, 0.0)
            z = jnp.dot(wb, h.astype(wb.dtype), preferred_element_type=jnp.float32) + y
            y = jnp.maximum(z, 0.0)

        # Only the real out_dim rows go back to HBM (lane-dense store).
        o_ref[...] = y[:out_dim, :].astype(o_ref.dtype)

    return kernel


def lga_chain(eff, x_pad, dist_row, out_dim):
    """x_pad:(C1p, Np) dist_row:(1, Np) -> (out_dim, Np). Single fused pallas_call."""
    C1p, Np = x_pad.shape
    TN = _pick_tn(Np)
    n_blocks = len(eff["blocks"])
    weights = [eff["w1"]] + [w for blk in eff["blocks"] for w in (blk["wa"], blk["wb"])]
    Mp = eff["w1"].shape[0]
    Hp = eff["blocks"][0]["wa"].shape[0] if n_blocks else 0

    in_specs = [
        pl.BlockSpec((C1p, TN), lambda j: (0, j)),   # streamed input tile
        pl.BlockSpec((1, TN), lambda j: (0, j)),     # geometric distance row
    ]
    # Whole-array, constant-index weight operands: the pipeline only issues a copy
    # when a block index changes, so these are fetched once for the entire call.
    in_specs += [pl.BlockSpec(w.shape, lambda j: (0, 0)) for w in weights]

    macs = Np * (Mp * C1p + n_blocks * 2 * Hp * Mp)
    w_bytes = sum(int(np.prod(w.shape)) * w.dtype.itemsize for w in weights)
    bytes_accessed = (int(x_pad.size) * x_pad.dtype.itemsize
                      + int(dist_row.size) * 4
                      + w_bytes
                      + out_dim * Np * jnp.dtype(OUT_DTYPE).itemsize)

    return pl.pallas_call(
        _make_chain_kernel(n_blocks, out_dim, one_row=out_dim),
        out_shape=jax.ShapeDtypeStruct((out_dim, Np), OUT_DTYPE),
        grid=(Np // TN,),
        in_specs=in_specs,
        out_specs=pl.BlockSpec((out_dim, TN), lambda j: (0, j)),
        compiler_params=pltpu.CompilerParams(
            # "parallel" is correct everywhere; on v7x swap for pltpu.CORE_PARALLEL if
            # profiling shows the two TensorCores don't split this axis.
            dimension_semantics=("parallel",),
        ),
        cost_estimate=pl.CostEstimate(flops=int(2 * macs), transcendentals=int(Np),
                                      bytes_accessed=int(bytes_accessed)),
    )(x_pad, dist_row, *weights)


# -----------------------------------------------------------------------------
# LGA forward (type='mn40')
# -----------------------------------------------------------------------------
def lga_forward(eff, lc_xyz, lc_x, knn_xyz, knn_x, *, out_dim):
    """lc_xyz:(B,G,3) lc_x:(B,G,Cl) knn_xyz:(B,G,K,3) knn_x:(B,G,K,Ck)
    -> (B, out_dim, G, K)."""
    B, G, K, _ = knn_xyz.shape
    C1p = eff["w1"].shape[1]

    # 'mn40' normalization: global unbiased std over all elements (== torch.std).
    mean_xyz = lc_xyz[:, :, None, :]
    diff = knn_xyz - mean_xyz
    std = jnp.std(diff, ddof=1)
    knn_xyz_n = diff / (std + BN_EPS)

    # concat grouped features with repeated center features -> (B,G,K,C1)
    lc_rep = jnp.broadcast_to(lc_x[:, :, None, :], (B, G, K, lc_x.shape[-1]))
    knn_cat = jnp.concatenate([knn_x, lc_rep], axis=-1)
    C1 = knn_cat.shape[-1]
    N = B * G * K
    Np = _round_up(N, 128)

    # channel-first flat layout (C1, N); the ones row at index C1 carries the folded
    # linear1 bias; channels zero-padded to C1p (multiple of 16), lanes padded to Np.
    # Padded lane columns produce finite garbage that is sliced off below (no lane
    # reductions happen inside the kernel, so they never contaminate real outputs).
    Xf = jnp.transpose(knn_cat, (3, 0, 1, 2)).reshape(C1, N)
    Xp = jnp.zeros((C1p, Np), jnp.float32)
    Xp = Xp.at[:C1, :N].set(Xf)
    Xp = Xp.at[C1, :].set(1.0)
    Xp = Xp.astype(X_DTYPE)

    # PosE_Geo distance: *normalized* knn_xyz vs *un-normalized* centers
    # (exactly what the reference module computes).
    pose_diff = knn_xyz_n - lc_xyz[:, :, None, :]
    dist = jnp.sqrt(jnp.sum(pose_diff * pose_diff, axis=-1))   # (B,G,K)
    dist_row = jnp.zeros((1, Np), jnp.float32).at[0, :N].set(dist.reshape(N))

    Y = lga_chain(eff, Xp, dist_row, out_dim)                  # (out_dim, Np)

    out = Y[:, :N].reshape(out_dim, B, G, K)
    return jnp.transpose(out, (1, 0, 2, 3)).astype(jnp.float32)


# -----------------------------------------------------------------------------
# Parameters (module-faithful) + host-side BN/bias folding into padded weights
# -----------------------------------------------------------------------------
def init_lga_params(key, out_dim, dim_expansion, block_num, use_xyz=True):
    keys = iter(jax.random.split(key, 64))

    def w_init(shape):
        return (jax.random.normal(next(keys), shape, jnp.float32)
                / np.sqrt(float(shape[-1])))

    def b_init(n):
        return jax.random.normal(next(keys), (n,), jnp.float32) * 0.01

    def bn(n):
        # freshly-constructed eval-mode BatchNorm: gamma=1, beta=0, rm=0, rv=1
        return dict(gamma=jnp.ones((n,), jnp.float32),
                    beta=jnp.zeros((n,), jnp.float32),
                    rm=jnp.zeros((n,), jnp.float32),
                    rv=jnp.ones((n,), jnp.float32))

    expand = 2 if dim_expansion == 1 else 1
    in1 = (3 + out_dim * expand) if use_xyz else out_dim * expand
    params = {"linear1": dict(w=w_init((out_dim, in1)), b=None, bn=bn(out_dim)),  # bias=False
              "linear2": []}
    half = out_dim // 2
    for _ in range(block_num):
        params["linear2"].append(dict(
            w1=w_init((half, out_dim)), b1=b_init(half), bn1=bn(half),
            w2=w_init((out_dim, half)), b2=b_init(out_dim), bn2=bn(out_dim)))
    return params


def fold_lga_params(params):
    """Fold eval-mode BN (+conv bias) into padded weight matrices (zeros elsewhere):
      w1 (Mp,C1p): [:M,:C1]=W*s,  [:M,C1]=b_eff            (col C1 == x's ones row)
      wa (Hp,Mp):  [:H,:M]=W1*s,  [:H,M]=b1_eff, [H,M]=1.0 (row H becomes h's ones row)
      wb (Mp,Hp):  [:M,:H]=W2*s,  [:M,H]=b2_eff            (row M stays 0 so the residual
                                                            keeps the activation ones row)
    """
    def scale_of(bnp):
        return bnp["gamma"] / jnp.sqrt(bnp["rv"] + BN_EPS)

    def bias_of(bnp, conv_b, scale):
        cb = 0.0 if conv_b is None else conv_b
        return (cb - bnp["rm"]) * scale + bnp["beta"]

    w1_raw = params["linear1"]["w"]
    M, C1 = w1_raw.shape
    H = M // 2
    Mp = _round_up(M + 1, 16)
    Hp = _round_up(H + 1, 16)
    C1p = _round_up(C1 + 1, 16)

    s1 = scale_of(params["linear1"]["bn"])
    w1 = jnp.zeros((Mp, C1p), jnp.float32)
    w1 = w1.at[:M, :C1].set(w1_raw * s1[:, None])
    w1 = w1.at[:M, C1].set(bias_of(params["linear1"]["bn"], params["linear1"]["b"], s1))

    blocks = []
    for blk in params["linear2"]:
        sa = scale_of(blk["bn1"])
        sb = scale_of(blk["bn2"])
        wa = jnp.zeros((Hp, Mp), jnp.float32)
        wa = wa.at[:H, :M].set(blk["w1"] * sa[:, None])
        wa = wa.at[:H, M].set(bias_of(blk["bn1"], blk["b1"], sa))
        wa = wa.at[H, M].set(1.0)      # propagates the constant-one channel into h
        wb = jnp.zeros((Mp, Hp), jnp.float32)
        wb = wb.at[:M, :H].set(blk["w2"] * sb[:, None])
        wb = wb.at[:M, H].set(bias_of(blk["bn2"], blk["b2"], sb))
        blocks.append(dict(wa=wa.astype(W_DTYPE), wb=wb.astype(W_DTYPE)))

    return {"w1": w1.astype(W_DTYPE), "blocks": blocks}


# -----------------------------------------------------------------------------
if __name__ == "__main__":
    # LGA(out_dim=32, alpha, beta, block_num=2, dim_expansion=2, type='mn40',
    #     use_xyz=True).  K fixed to 40 by the reference PosE_Geo expand(..., 40).
    B, G, K = 2, 16, 40
    out_dim, dim_expansion, block_num = 32, 2, 2
    Cl = out_dim // dim_expansion        # center feature dim from the previous stage
    Ck = Cl + 3                          # grouped features already carry xyz (use_xyz)
    assert Ck + Cl == 3 + out_dim        # linear1 in_channels

    key = jax.random.PRNGKey(0)
    kp, k1, k2, k3, k4 = jax.random.split(key, 5)
    params = init_lga_params(kp, out_dim, dim_expansion, block_num)
    eff = fold_lga_params(params)

    lc_xyz = jax.random.normal(k1, (B, G, 3), jnp.float32)
    lc_x = jax.random.normal(k2, (B, G, Cl), jnp.float32)
    knn_xyz = lc_xyz[:, :, None, :] + 0.1 * jax.random.normal(
        k3, (B, G, K, 3), jnp.float32)
    knn_x = jax.random.normal(k4, (B, G, K, Ck), jnp.float32)

    fwd = jax.jit(lga_forward, static_argnames=("out_dim",))
    out = jax.block_until_ready(fwd(eff, lc_xyz, lc_x, knn_xyz, knn_x, out_dim=out_dim))
    assert out.shape == (B, out_dim, G, K)
    assert bool(jnp.all(jnp.isfinite(out)))
    print("KERNEL_OK")
</pallas_src>

<mosaic_0001>
module attributes {stable_mosaic.version = 11 : i64} {
  func.func @kernel(%arg0: i32, %arg1: memref<48x640xbf16, #tpu.memory_space<vmem>>, %arg2: memref<1x640xf32, #tpu.memory_space<vmem>>, %arg3: memref<48x48xbf16, #tpu.memory_space<vmem>>, %arg4: memref<32x48xbf16, #tpu.memory_space<vmem>>, %arg5: memref<48x32xbf16, #tpu.memory_space<vmem>>, %arg6: memref<32x48xbf16, #tpu.memory_space<vmem>>, %arg7: memref<48x32xbf16, #tpu.memory_space<vmem>>, %arg8: memref<32x640xf32, #tpu.memory_space<vmem>>) attributes {dimension_semantics = [#tpu.dimension_semantics<parallel>], iteration_bounds = array<i64: 2>, scalar_prefetch = 0 : i64, scratch_operands = 0 : i64, tpu.core_type = #tpu.core_type<tc>, window_params = [{transform_indices = @transform_0, window_bounds = array<i64: 48, 640>}, {transform_indices = @transform_1, window_bounds = array<i64: 1, 640>}, {pipeline_mode = #tpu.pipeline_mode<synchronous>, transform_indices = @transform_2, window_bounds = array<i64: 48, 48>}, {pipeline_mode = #tpu.pipeline_mode<synchronous>, transform_indices = @transform_3, window_bounds = array<i64: 32, 48>}, {pipeline_mode = #tpu.pipeline_mode<synchronous>, transform_indices = @transform_4, window_bounds = array<i64: 48, 32>}, {pipeline_mode = #tpu.pipeline_mode<synchronous>, transform_indices = @transform_5, window_bounds = array<i64: 32, 48>}, {pipeline_mode = #tpu.pipeline_mode<synchronous>, transform_indices = @transform_6, window_bounds = array<i64: 48, 32>}, {transform_indices = @transform_7, window_bounds = array<i64: 32, 640>}]} {
    %c0 = arith.constant 0 : index
    %c0_0 = arith.constant 0 : index
    %0 = vector.load %arg3[%c0, %c0_0] : memref<48x48xbf16, #tpu.memory_space<vmem>>, vector<48x48xbf16>
    %c0_1 = arith.constant 0 : index
    %c0_2 = arith.constant 0 : index
    %1 = vector.load %arg1[%c0_1, %c0_2] : memref<48x640xbf16, #tpu.memory_space<vmem>>, vector<48x640xbf16>
    %cst = arith.constant dense<0.000000e+00> : vector<48x640xf32>
    %2 = tpu.matmul %0, %1, %cst {dimension_numbers = #tpu.dot_dimension_numbers<[1], [0], [0], [1], [0, 0, 1, 1], [], []>} : vector<48x48xbf16>, vector<48x640xbf16>, vector<48x640xf32> -> vector<48x640xf32>
    %cst_3 = arith.constant 0.000000e+00 : f32
    %3 = vector.broadcast %cst_3 : f32 to vector<48x640xf32>
    %4 = arith.maximumf %2, %3 : vector<48x640xf32>
    %c0_4 = arith.constant 0 : index
    %c0_5 = arith.constant 0 : index
    %5 = vector.load %arg2[%c0_4, %c0_5] : memref<1x640xf32, #tpu.memory_space<vmem>>, vector<1x640xf32>
    %cst_6 = arith.constant -5.000000e-01 : f32
    %6 = vector.broadcast %cst_6 : f32 to vector<1x640xf32>
    %7 = arith.mulf %5, %6 : vector<1x640xf32>
    %8 = math.exp %7 : vector<1x640xf32>
    %9 = vector.broadcast %8 : vector<1x640xf32> to vector<48x640xf32>
    %10 = arith.mulf %4, %9 : vector<48x640xf32>
    %11 = tpu.iota {dimensions = array<i32: 0>} : vector<48x640xi32>
    %c32_i32 = arith.constant 32 : i32
    %12 = vector.broadcast %c32_i32 : i32 to vector<48x640xi32>
    %13 = arith.cmpi eq, %11, %12 : vector<48x640xi32>
    %cst_7 = arith.constant 1.000000e+00 : f32
    %14 = vector.broadcast %cst_7 : f32 to vector<48x640xf32>
    %15 = arith.select %13, %14, %10 : vector<48x640xi1>, vector<48x640xf32>
    %c0_8 = arith.constant 0 : index
    %c0_9 = arith.constant 0 : index
    %16 = vector.load %arg4[%c0_8, %c0_9] : memref<32x48xbf16, #tpu.memory_space<vmem>>, vector<32x48xbf16>
    %c0_10 = arith.constant 0 : index
    %c0_11 = arith.constant 0 : index
    %17 = vector.load %arg5[%c0_10, %c0_11] : memref<48x32xbf16, #tpu.memory_space<vmem>>, vector<48x32xbf16>
    %18 = arith.truncf %15 : vector<48x640xf32> to vector<48x640xbf16>
    %cst_12 = arith.constant dense<0.000000e+00> : vector<32x640xf32>
    %19 = tpu.matmul %16, %18, %cst_12 {dimension_numbers = #tpu.dot_dimension_numbers<[1], [0], [0], [1], [0, 0, 1, 1], [], []>} : vector<32x48xbf16>, vector<48x640xbf16>, vector<32x640xf32> -> vector<32x640xf32>
    %cst_13 = arith.constant 0.000000e+00 : f32
    %20 = vector.broadcast %cst_13 : f32 to vector<32x640xf32>
    %21 = arith.maximumf %19, %20 : vector<32x640xf32>
    %22 = arith.truncf %21 : vector<32x640xf32> to vector<32x640xbf16>
    %cst_14 = arith.constant dense<0.000000e+00> : vector<48x640xf32>
    %23 = tpu.matmul %17, %22, %cst_14 {dimension_numbers = #tpu.dot_dimension_numbers<[1], [0], [0], [1], [0, 0, 1, 1], [], []>} : vector<48x32xbf16>, vector<32x640xbf16>, vector<48x640xf32> -> vector<48x640xf32>
    %24 = arith.addf %23, %15 : vector<48x640xf32>
    %cst_15 = arith.constant 0.000000e+00 : f32
    %25 = vector.broadcast %cst_15 : f32 to vector<48x640xf32>
    %26 = arith.maximumf %24, %25 : vector<48x640xf32>
    %c0_16 = arith.constant 0 : index
    %c0_17 = arith.constant 0 : index
    %27 = vector.load %arg6[%c0_16, %c0_17] : memref<32x48xbf16, #tpu.memory_space<vmem>>, vector<32x48xbf16>
    %c0_18 = arith.constant 0 : index
    %c0_19 = arith.constant 0 : index
    %28 = vector.load %arg7[%c0_18, %c0_19] : memref<48x32xbf16, #tpu.memory_space<vmem>>, vector<48x32xbf16>
    %29 = arith.truncf %26 : vector<48x640xf32> to vector<48x640xbf16>
    %cst_20 = arith.constant dense<0.000000e+00> : vector<32x640xf32>
    %30 = tpu.matmul %27, %29, %cst_20 {dimension_numbers = #tpu.dot_dimension_numbers<[1], [0], [0], [1], [0, 0, 1, 1], [], []>} : vector<32x48xbf16>, vector<48x640xbf16>, vector<32x640xf32> -> vector<32x640xf32>
    %cst_21 = arith.constant 0.000000e+00 : f32
    %31 = vector.broadcast %cst_21 : f32 to vector<32x640xf32>
    %32 = arith.maximumf %30, %31 : vector<32x640xf32>
    %33 = arith.truncf %32 : vector<32x640xf32> to vector<32x640xbf16>
    %cst_22 = arith.constant dense<0.000000e+00> : vector<48x640xf32>
    %34 = tpu.matmul %28, %33, %cst_22 {dimension_numbers = #tpu.dot_dimension_numbers<[1], [0], [0], [1], [0, 0, 1, 1], [], []>} : vector<48x32xbf16>, vector<32x640xbf16>, vector<48x640xf32> -> vector<48x640xf32>
    %35 = arith.addf %34, %26 : vector<48x640xf32>
    %cst_23 = arith.constant 0.000000e+00 : f32
    %36 = vector.broadcast %cst_23 : f32 to vector<48x640xf32>
    %37 = arith.maximumf %35, %36 : vector<48x640xf32>
    %38 = vector.extract_strided_slice %37 {offsets = [0, 0], sizes = [32, 640], strides = [1, 1]} : vector<48x640xf32> to vector<32x640xf32>
    %c0_24 = arith.constant 0 : index
    %c0_25 = arith.constant 0 : index
    %39 = vector.load %arg8[%c0_24, %c0_25] : memref<32x640xf32, #tpu.memory_space<vmem>>, vector<32x640xf32>
    tpu.vector_store %arg8[%c0_24, %c0_25], %38 {strides = array<i32>} : memref<32x640xf32, #tpu.memory_space<vmem>>, vector<32x640xf32>,
    return
  }
  func.func @transform_0(%arg0: i32) -> (i32, i32) {
    %c0_i32 = arith.constant 0 : i32
    %c0_i32_0 = arith.constant 0 : i32
    return %c0_i32, %arg0 : i32, i32
  }
  func.func @transform_1(%arg0: i32) -> (i32, i32) {
    %c0_i32 = arith.constant 0 : i32
    %c0_i32_0 = arith.constant 0 : i32
    return %c0_i32, %arg0 : i32, i32
  }
  func.func @transform_2(%arg0: i32) -> (i32, i32) {
    %c0_i32 = arith.constant 0 : i32
    %c0_i32_0 = arith.constant 0 : i32
    %c0_i32_1 = arith.constant 0 : i32
    return %c0_i32, %c0_i32_0 : i32, i32
  }
  func.func @transform_3(%arg0: i32) -> (i32, i32) {
    %c0_i32 = arith.constant 0 : i32
    %c0_i32_0 = arith.constant 0 : i32
    %c0_i32_1 = arith.constant 0 : i32
    return %c0_i32, %c0_i32_0 : i32, i32
  }
  func.func @transform_4(%arg0: i32) -> (i32, i32) {
    %c0_i32 = arith.constant 0 : i32
    %c0_i32_0 = arith.constant 0 : i32
    %c0_i32_1 = arith.constant 0 : i32
    return %c0_i32, %c0_i32_0 : i32, i32
  }
  func.func @transform_5(%arg0: i32) -> (i32, i32) {
    %c0_i32 = arith.constant 0 : i32
    %c0_i32_0 = arith.constant 0 : i32
    %c0_i32_1 = arith.constant 0 : i32
    return %c0_i32, %c0_i32_0 : i32, i32
  }
  func.func @transform_6(%arg0: i32) -> (i32, i32) {
    %c0_i32 = arith.constant 0 : i32
    %c0_i32_0 = arith.constant 0 : i32
    %c0_i32_1 = arith.constant 0 : i32
    return %c0_i32, %c0_i32_0 : i32, i32
  }
  func.func @transform_7(%arg0: i32) -> (i32, i32) {
    %c0_i32 = arith.constant 0 : i32
    %c0_i32_0 = arith.constant 0 : i32
    return %c0_i32, %arg0 : i32, i32
  }
}

</mosaic_0001>

<bundles_post_ra>
// kernel: lga_forward.1
= control target key start
LH: loop header
LB: loop body
LE: loop exit
PB: predicated region body
PF: predicated region fallthrough
CT: control target
= control target key end

     0   :  { %s1863_s24 = smov 0   ;;  %s1865_s25 = smov 0   ;;  %s2499_s0 = inlined_call_operand.vmem [shape: bf16[48,1280], index: 0, kind: input, shape index: {}]   ;;  %s2500_s1 = inlined_call_operand.vmem [shape: f32[1,1280], index: 1, kind: input, shape index: {}]   ;;  %s2501_s2 = inlined_call_operand.vmem [shape: bf16[48,48], index: 2, kind: input, shape index: {}]   ;;  %s2502_s3 = inlined_call_operand.vmem [shape: bf16[32,48], index: 3, kind: input, shape index: {}]   ;;  %s2503_s4 = inlined_call_operand.vmem [shape: bf16[48,32], index: 4, kind: input, shape index: {}]   ;;  %s2504_s5 = inlined_call_operand.vmem [shape: bf16[32,48], index: 5, kind: input, shape index: {}]   ;;  %s2505_s6 = inlined_call_operand.vmem [shape: bf16[48,32], index: 6, kind: input, shape index: {}]   ;;  %s2506_s7 = inlined_call_operand.vmem [shape: f32[32,1280], index: 7, kind: output, shape index: {}]  }
   0x1   :  { %s1867_s26 = smov 0  }
   0x2 LB: > { %s1879_s27 = sadd.s32 4294967295, %s1821_s26   ;;  %s1882_s28 = sadd.s32 1, %s1821_s26   ;;  %s1821_s26 = sphi %s1867_s26, %s2510_s26   ;;  %s1817_s25 = sphi %s1865_s25, %s2509_s25   ;;  %s1813_s24 = sphi %s1863_s24, %s2508_s24  }
   0x3   : > { %s21_s29 = ssub.s32 %s1821_s26, %s1882_s28  ;;  %s24_s30 = sadd.s32 1, %s1817_s25 }
   0x4   : > { %p22_p0 = scmp.eq.s32.totalorder %s21_s29, 0  ;;  %p31_p1 = scmp.ne.s32.totalorder %s1817_s25, %s1813_s24 }
   0x5   : > { %p32_p2 = scmp.eq.s32.totalorder %s1821_s26, 0  ;;  %p192_p3 = scmp.eq.s32.totalorder %s1879_s27, 1 }
   0x6   : > { %s1892_s8 = scalar_select %p22_p0, %s1817_s25, %s24_s30  }
   0x7   : > { %p33_p4 = por %p32_p2, %p31_p1  ;;  %p1894_p5 = por %p192_p3, %p31_p1 }
   0x8   : > { %p1542_p6 = scmp.ge.s32.totalorder %s1821_s26, 2 }
   0xa   : > { %229 = sbr.rel (%p1542_p6) target bundleno = 38 (0x26), region = 36 }
   0xf   : > { %232 = sbr.rel (!%p33_p4) target bundleno = 38 (0x26), region = 40  ;;  %s234_s10 = sand.u32 (%p33_p4), 1, %s1817_s25  }
  0x10   : > { %s1737_s11 = smul.u32 (%p33_p4), 20, %s1821_s26 }
  0x11   : > { %s1770_s12 = smul.u32 (%p33_p4), 120, %s234_s10 }
  0x12   : > { %s1904_s15 = scalar_lea.vmem (%p33_p4), %s2499_s0, %s1737_s11 }
  0x13   : > { %v254_v0 = vld [vmem:[%s1904_s15] sm:$0xff] (%p33_p4)  ;;  %v256_v1 = vld [vmem:[%s1904_s15 + $0x8] sm:$0xff] (%p33_p4)  ;;  %s1909_s16 = scalar_lea.vmem (%p33_p4), [#allocation2], %s1770_s12  ;;  %v260_v3 = vld [vmem:[%s1904_s15 + $0x30] sm:$0xff] (%p33_p4) }
  0x14   : > { %v258_v2 = vld [vmem:[%s1904_s15 + $0x28] sm:$0xff]  ;;  %255 = vst [vmem:[%s1909_s16] sm:$0xff] %v254_v0  ;;  %v262_v4 = vld [vmem:[%s1904_s15 + $0x50] sm:$0xff]  ;;  %v264_v5 = vld [vmem:[%s1904_s15 + $0x58] sm:$0xff] }
  0x15   : > { %257 = vst [vmem:[%s1909_s16 + $0x8] sm:$0xff] %v256_v1  ;;  %v266_v6 = vld [vmem:[%s1904_s15 + $0x78] sm:$0xff]  ;;  %v268_v7 = vld [vmem:[%s1904_s15 + $0x80] sm:$0xff]  ;;  %v272_v9 = vld [vmem:[%s1904_s15 + $0xa8] sm:$0xff] }
  0x16   : > { %259 = vst [vmem:[%s1909_s16 + $0x14] sm:$0xff] %v258_v2  ;;  %v270_v8 = vld [vmem:[%s1904_s15 + $0xa0] sm:$0xff]  ;;  %v274_v10 = vld [vmem:[%s1904_s15 + $0xc8] sm:$0xff]  ;;  %v276_v11 = vld [vmem:[%s1904_s15 + $0xd0] sm:$0xff] }
  0x17   : > { %261 = vst [vmem:[%s1909_s16 + $0x1c] sm:$0xff] %v260_v3  ;;  %v1544_v12 = vld [vmem:[%s1904_s15 + $0x10] sm:$0xf]  ;;  %v1546_v13 = vld [vmem:[%s1904_s15 + $0x38] sm:$0xf] }
  0x18   : > { %263 = vst [vmem:[%s1909_s16 + $0x28] sm:$0xff] %v262_v4  ;;  %v1548_v14 = vld [vmem:[%s1904_s15 + $0x60] sm:$0xf]  ;;  %v1550_v15 = vld [vmem:[%s1904_s15 + $0x88] sm:$0xf] }
  0x19   : > { %265 = vst [vmem:[%s1909_s16 + $0x30] sm:$0xff] %v264_v5  ;;  %v1552_v16 = vld [vmem:[%s1904_s15 + $0xb0] sm:$0xf]  ;;  %v1554_v17 = vld [vmem:[%s1904_s15 + $0xd8] sm:$0xf] }
  0x1a   : > { %267 = vst [vmem:[%s1909_s16 + $0x3c] sm:$0xff] %v266_v6 }
  0x1b   : > { %269 = vst [vmem:[%s1909_s16 + $0x44] sm:$0xff] %v268_v7 }
  0x1c   : > { %271 = vst [vmem:[%s1909_s16 + $0x50] sm:$0xff] %v270_v8 }
  0x1d   : > { %273 = vst [vmem:[%s1909_s16 + $0x58] sm:$0xff] %v272_v9 }
  0x1e   : > { %275 = vst [vmem:[%s1909_s16 + $0x64] sm:$0xff] %v274_v10 }
  0x1f   : > { %277 = vst [vmem:[%s1909_s16 + $0x6c] sm:$0xff] %v276_v11 }
  0x20   : > { %1545 = vst [vmem:[%s1909_s16 + $0x10] sm:$0xf] %v1544_v12 }
  0x21   : > { %1547 = vst [vmem:[%s1909_s16 + $0x24] sm:$0xf] %v1546_v13 }
  0x22   : > { %1549 = vst [vmem:[%s1909_s16 + $0x38] sm:$0xf] %v1548_v14 }
  0x23   : > { %1551 = vst [vmem:[%s1909_s16 + $0x4c] sm:$0xf] %v1550_v15 }
  0x24   : > { %1553 = vst [vmem:[%s1909_s16 + $0x60] sm:$0xf] %v1552_v16 }
  0x25   : > { %1555 = vst [vmem:[%s1909_s16 + $0x74] sm:$0xf] %v1554_v17 }
  0x26 PF: > { %p1556_p7 = scmp.ge.s32.totalorder %s1821_s26, 1  ;;  %p310_p8 = scmp.lt.s32.totalorder %s1821_s26, 3 }
  0x28   : > { %p311_p9 = pnand %p1556_p7, %p310_p8 }
  0x29   : > { %s317_s17 = sand.u32 (!%p311_p9), 1, %s1813_s24   ;;  %s352_s30 = smul.u32 (!%p311_p9), 5, %s1879_s27 }
  0x2a   : > { %314 = sbr.rel (%p311_p9) target bundleno = 981 (0x3d5), region = 70 }
  0x2b   : > { %s1771_s18 = smul.u32 (!%p311_p9), 120, %s317_s17  ;;  %p353_p10 = scmp.lt.s32.totalorder (!%p311_p9), %s352_s30, 9 }
  0x2d   : > { %s1949_s19 = scalar_lea.vmem (!%p311_p9), [#allocation2], %s1771_s18  ;;  %s1772_s18 = smul.u32 (!%p311_p9), 160, %s317_s17 }
  0x2f   : > { %v1611_v18 = vld [vmem:[%s1949_s19 + $0x50] sm:$0xf]  ;;  %v1753_v19 = vld [vmem:[%s1949_s19 + $0x60] sm:$0xf0]  ;;  %v1751_v20 = vld [vmem:[%s1949_s19 + $0x54] sm:$0xf]  ;;  %v681_v11 = vlaneseq }
  0x30   : > { %v1612_v21 = vor.u32 %v1753_v19, %v1611_v18  ;;  %v1613_v22 = vld [vmem:[%s1949_s19 + $0x64] sm:$0xf0]  ;;  %v1748_v24 = vld [vmem:[%s1949_s19 + $0x38] sm:$0xf0]  ;;  %v1746_v26 = vld [vmem:[%s1949_s19 + $0x2c] sm:$0xf] }
  0x31   : > { %v1591_v23 = vld [vmem:[%s1949_s19 + $0x28] sm:$0xf]  ;;  %v1616_v25 = vor.u32 %v1751_v20, %v1613_v22  ;;  %v1593_v27 = vld [vmem:[%s1949_s19 + $0x3c] sm:$0xf0]  ;;  %v1743_v30 = vld [vmem:[%s1949_s19 + $0x10] sm:$0xf0] }
  0x32   : > { %491 = vmatpush.bf16.msra.mxu0 %v1612_v21  ;;  %v1592_v28 = vor.u32 %v1748_v24, %v1591_v23  ;;  %v1571_v29 = vld [vmem:[%s1949_s19] sm:$0xf]  ;;  %v1596_v31 = vor.u32 %v1746_v26, %v1593_v27  ;;  %v1752_v32 = vld [vmem:[%s1949_s19 + $0x5c] sm:$0xf]  ;;  %v1621_v33 = vld [vmem:[%s1949_s19 + $0x6c] sm:$0xf0] }
  0x33   : > { %1767 = vmatpush.bf16.msra.mxu2 %v1616_v25  ;;  %v1747_v34 = vld [vmem:[%s1949_s19 + $0x34] sm:$0xf]  ;;  %515 = vmatpush.bf16.msra.mxu1 %v1616_v25  ;;  %v1741_v35 = vld [vmem:[%s1949_s19 + $0x4] sm:$0xf]  ;;  %v1573_v36 = vld [vmem:[%s1949_s19 + $0x14] sm:$0xf0]  ;;  %v1624_v37 = vor.u32 %v1752_v32, %v1621_v33  ;;  %v1572_v41 = vor.u32 %v1743_v30, %v1571_v29 }
  0x34   : > { %v1601_v38 = vld [vmem:[%s1949_s19 + $0x44] sm:$0xf0]  ;;  %v1619_v39 = vld [vmem:[%s1949_s19 + $0x58] sm:$0xf]  ;;  %v1754_v40 = vld [vmem:[%s1949_s19 + $0x68] sm:$0xf0]  ;;  %v1576_v43 = vor.u32 %v1741_v35, %v1573_v36 }
  0x35   : > { %563 = vmatpush.bf16.msra.mxu3 %v1624_v37  ;;  %v1604_v42 = vor.u32 %v1747_v34, %v1601_v38  ;;  %v1742_v44 = vld [vmem:[%s1949_s19 + $0xc] sm:$0xf]  ;;  %v1581_v45 = vld [vmem:[%s1949_s19 + $0x1c] sm:$0xf0]  ;;  %v1620_v46 = vor.u32 %v1754_v40, %v1619_v39  ;;  %v1599_v48 = vld [vmem:[%s1949_s19 + $0x30] sm:$0xf] }
  0x36   : > { %492 = vmatpush.bf16.msra.mxu0 %v1592_v28  ;;  %v1738_v47 = vld [vmem:[%s2501_s2] sm:$0xff]  ;;  %vm476_vm0 = vcmask 392192   ;;  %v1739_v50 = vld [vmem:[%s2501_s2 + $0x8] sm:$0xff]  ;;  %v1584_v51 = vor.u32 %v1742_v44, %v1581_v45  ;;  %v1744_v54 = vld [vmem:[%s1949_s19 + $0x18] sm:$0xf0]  ;;  %s2512_s30 = smov (!%p353_p10, %s352_s30), 9 }
  0x37   : > { %1768 = vmatpush.bf16.msra.mxu2 %v1596_v31  ;;  %516 = vmatpush.bf16.msra.mxu1 %v1596_v31  ;;  %v1749_v49 = vld [vmem:[%s1949_s19 + $0x40] sm:$0xf0]  ;;  %v1579_v53 = vld [vmem:[%s1949_s19 + $0x8] sm:$0xf]  ;;  %v1627_v55 = vld [vmem:[%s1949_s19 + $0x60] sm:$0xf]  ;;  %s355_s12 = scalar_lea.vmem %s2500_s1, %s2512_s30 }
  0x38   : > { %v1600_v52 = vor.u32 %v1749_v49, %v1599_v48  ;;  %v1755_v56 = vld [vmem:[%s1949_s19 + $0x70] sm:$0xf0]  ;;  %v1607_v57 = vld [vmem:[%s1949_s19 + $0x38] sm:$0xf]  ;;  %v1750_v59 = vld [vmem:[%s1949_s19 + $0x48] sm:$0xf0]  ;;  %v1580_v60 = vor.u32 %v1744_v54, %v1579_v53 }
  0x39   : > { %564 = vmatpush.bf16.msra.mxu3 %v1604_v42  ;;  %v1628_v58 = vor.u32 %v1755_v56, %v1627_v55  ;;  %v1608_v61 = vor.u32 %v1750_v59, %v1607_v57  ;;  %v1587_v62 = vld [vmem:[%s1949_s19 + $0x10] sm:$0xf]  ;;  %v1745_v63 = vld [vmem:[%s1949_s19 + $0x20] sm:$0xf0]  ;;  %v682_v14 = vshrl.u32 %v681_v11, 7  ;;  %vm905_vm2 = vcmask 261120  }
  0x3a   : > { %493 = vmatpush.bf16.msra.mxu0 %v1572_v41  ;;  %v1588_v0 = vor.u32 %v1745_v63, %v1587_v62  ;;  %v1740_v1 = vld [vmem:[%s2501_s2 + $0x10] sm:$0xff]  ;;  %v636_v5 = vld [vmem:[%s355_s12] sm:$0x1f]  ;;  %s2383_s19 = scalar_lea.vmem [#allocation3], %s1772_s18  ;;  %s1766_s24 = smul.u32 (%p1894_p5), 40, %s1879_s27 }
  0x3b   : > { %1769 = vmatpush.bf16.msra.mxu2 %v1576_v43  ;;  %517 = vmatpush.bf16.msra.mxu1 %v1576_v43  ;;  %v637_v7 = vmul.f32 -0.5, %v636_v5  ;;  %v2019_v19 = vadd.s32 32, %v682_v14  ;;  %v2059_v56 = vld [vmem:[%s2502_s3] sm:$0xff] }
  0x3c   : > { %s2449_s21 = scalar_lea.vmem (%p1894_p5), %s2506_s7, %s1766_s24 }
  0x3d   : > { %1629 = vmatmul.msk.bf16.vlgmr.msra.gmra.mxu0 %vm476_vm0, %v1738_v47  ;;  %565 = vmatpush.bf16.msra.mxu3 %v1584_v51  ;;  %v638_v9 = vmul.f32 1.442695, %v637_v7  ;;  %vm692_vm1 = vcmp.eq.s32.totalorder %v2019_v19, 32 }
  0x3e   : > { %1633 = vmatmul.msk.bf16.vlgmr.msra.gmra.mxu2 %vm476_vm0, %v1739_v50  ;;  %1632 = vmatmul.msk.bf16.vlgmr.msra.gmra.mxu1 %vm476_vm0, %v1738_v47 }
  0x3f   : > { %539 = vmatpush.bf16.msrb.mxu2 %v1620_v46  ;;  %587 = vmatpush.bf16.msrb.mxu0 %v1628_v58  ;;  %1797 = vpow2.f32 %v638_v9 }
  0x40   : > { %1638 = vmatmul.msk.bf16.vlgmr.msra.gmra.mxu3 %vm476_vm0, %v1738_v47 }
  0x43   : > { %540 = vmatpush.bf16.msrb.mxu2 %v1600_v52  ;;  %588 = vmatpush.bf16.msrb.mxu0 %v1608_v61 }
  0x45   : > { %v2017_v18 = vpop.eup %1797 }
  0x46   : > { %v642_v21 = vperm.slane %v2017_v18, 1  ;;  %v641_v38 = vperm.slane %v2017_v18, 0  ;;  %v644_v51 = vperm.slane %v2017_v18, 3 }
  0x47   : > { %541 = vmatpush.bf16.msrb.mxu2 %v1580_v60  ;;  %589 = vmatpush.bf16.msrb.mxu0 %v1588_v0 }
  0x4d   : > { %1630 = vmatmul.msk.bf16.gmra.mxu0 %vm476_vm0, %v1739_v50 }
  0x4e   : > { %1634 = vmatmul.msk.bf16.gmra.mxu2 %vm476_vm0, %v1740_v1 }
  0x50   : > { %1639 = vmatmul.msk.bf16.gmra.mxu3 %vm476_vm0, %v1739_v50 }
  0x5d   : > { %1631 = vmatmul.msk.bf16.gmra.mxu0 %vm476_vm0, %v1740_v1 }
  0x5e   : > { %1635 = vmatmul.msk.bf16.vlgmr.msrb.gmra.mxu2 %vm476_vm0, %v1738_v47 }
  0x60   : > { %1640 = vmatmul.msk.bf16.gmra.mxu3 %vm476_vm0, %v1740_v1 }
  0x6d   : > { %1641 = vmatmul.msk.bf16.vlgmr.msrb.gmra.mxu0 %vm476_vm0, %v1738_v47 }
  0x6e   : > { %1636 = vmatmul.msk.bf16.gmra.mxu2 %vm476_vm0, %v1739_v50 }
  0x7d   : > { %1642 = vmatmul.msk.bf16.gmra.mxu0 %vm476_vm0, %v1739_v50 }
  0x7e   : > { %1637 = vmatmul.msk.bf16.gmra.mxu2 %vm476_vm0, %v1740_v1 }
  0x8d   : > { %1643 = vmatmul.msk.bf16.gmra.mxu0 %vm476_vm0, %v1740_v1 }
  0xba   : > { %v2006_v2 = vpop.f32.mrf.mxu0 }
  0xbb   : > { %v519_v13 = vpop.f32.mrf.mxu1  ;;  %v606_v58 = vmax.f32 %v2006_v2, 0.0 }
  0xbc   : > { %v607_v30 = vmax.f32 %v519_v13, 0.0 }
  0xbd   : > { %v2074_v5 = vmul.f32 %v641_v38, %v606_v58 }
  0xbe   : > { %v2036_v39 = vmul.f32 %v642_v21, %v607_v30 }
  0xc1   : > { %v524_v3 = vpop.f32.mrf.mxu2 }
  0xc2   : > { %v2011_v4 = vpop.f32.mrf.mxu0  ;;  %v617_v25 = vmax.f32 %v524_v3, 0.0 }
  0xc3   : > { %v2013_v6 = vpop.f32.mrf.mxu3  ;;  %v521_v24 = vpop.f32.mrf.mxu1  ;;  %v611_v54 = vmax.f32 %v2011_v4, 0.0 }
  0xc4   : > { %v612_v32 = vmax.f32 %v521_v24, 0.0  ;;  %v2029_v34 = vmul.f32 %v642_v21, %v617_v25  ;;  %v609_v13 = vmax.f32 %v2013_v6, 0.0  ;;  %v1757_v6 = vld [vmem:[%s2502_s3 + $0x8] sm:$0xff] }
  0xc5   : > { %v2072_v3 = vmul.f32 %v641_v38, %v611_v54 }
  0xc6   : > { %v2038_v40 = vmul.f32 %v642_v21, %v612_v32 }
  0xc8   : > { %v735_v47 = vpack.c.bf16 %v2038_v40, %v2036_v39 }
  0xc9   : > { %v526_v8 = vpop.f32.mrf.mxu2 }
  0xca   : > { %v500_v10 = vpop.f32.mrf.mxu0  ;;  %v622_v26 = vmax.f32 %v526_v8, 0.0 }
  0xcb   : > { %v2015_v12 = vpop.f32.mrf.mxu3  ;;  %v616_v49 = vmax.f32 %v500_v10, 0.0  ;;  %v734_v10 = vpack.c.bf16 %v2072_v3, %v2074_v5 }
  0xcc   : > { %v2031_v35 = vmul.f32 %v642_v21, %v622_v26  ;;  %v614_v14 = vmax.f32 %v2015_v12, 0.0 }
  0xcd   : > { %v2064_v59 = vmul.f32 %v641_v38, %v616_v49 }
  0xce   : > { %v740_v44 = vpack.c.bf16 %v2031_v35, %v2029_v34 }
  0xd1   : > { %v529_v15 = vpop.f32.mrf.mxu2 }
  0xd2   : > { %v502_v16 = vpop.f32.mrf.mxu0  ;;  %v627_v17 = vmax.f32 %v529_v15, 0.0 }
  0xd3   : > { %v572_v20 = vpop.f32.mrf.mxu3  ;;  %v621_v45 = vmax.f32 %v502_v16, 0.0 }
  0xd4   : > { %v672_v22 = vmul.f32 %v642_v21, %v627_v17  ;;  %v619_v63 = vmax.f32 %v572_v20, 0.0 }
  0xd5   : > { %v2061_v57 = vmul.f32 %v641_v38, %v621_v45 }
  0xd6   : > { %v2025_v29 = vsel %vm692_vm1, 1.0, %v672_v22  ;;  %v2080_v8 = vmul.f32 %v644_v51, %v619_v63  ;;  %v2098_v22 = vmul.f32 %v644_v51, %v614_v14 }
  0xd7   : > { %v739_v1 = vpack.c.bf16 %v2061_v57, %v2064_v59 }
  0xd9   : > { %v531_v23 = vpop.f32.mrf.mxu2 }
  0xda   : > { %v632_v27 = vmax.f32 %v531_v23, 0.0  ;;  %v505_v28 = vpop.f32.mrf.mxu0 }
  0xdb   : > { %v574_v33 = vpop.f32.mrf.mxu3  ;;  %v626_v37 = vmax.f32 %v505_v28, 0.0  ;;  %v643_v28 = vperm.slane %v2017_v18, 2 }
  0xdc   : > { %v2027_v31 = vmul.f32 %v642_v21, %v632_v27  ;;  %v624_v0 = vmax.f32 %v574_v33, 0.0  ;;  %v2096_v21 = vmul.f32 %v644_v51, %v609_v13 }
  0xdd   : > { %v671_v42 = vmul.f32 %v641_v38, %v626_v37 }
  0xde   : > { %v745_v36 = vpack.c.bf16 %v2027_v31, %v2025_v29  ;;  %v2082_v9 = vmul.f32 %v644_v51, %v624_v0  ;;  %v737_v23 = vpack.c.bf16 %v2098_v22, %v2096_v21 }
  0xdf   : > { %v2051_v52 = vsel %vm692_vm1, 1.0, %v671_v42 }
  0xe0   : > { %789 = vmatpush.bf16.msra.mxu2 %v745_v36  ;;  %v742_v20 = vpack.c.bf16 %v2082_v9, %v2080_v8 }
  0xe1   : > { %v2040_v41 = vpop.f32.mrf.mxu2 }
  0xe2   : > { %v507_v43 = vpop.f32.mrf.mxu0 }
  0xe3   : > { %v631_v46 = vmax.f32 %v507_v43, 0.0  ;;  %v577_v48 = vpop.f32.mrf.mxu3 }
  0xe4   : > { %790 = vmatpush.bf16.msra.mxu2 %v740_v44  ;;  %v629_v53 = vmax.f32 %v577_v48, 0.0  ;;  %v608_v44 = vmax.f32 %v2040_v41, 0.0 }
  0xe5   : > { %v2046_v50 = vmul.f32 %v641_v38, %v631_v46 }
  0xe6   : > { %v674_v62 = vmul.f32 %v644_v51, %v629_v53  ;;  %v2122_v53 = vmul.f32 %v643_v28, %v608_v44 }
  0xe7   : > { %v744_v55 = vpack.c.bf16 %v2046_v50, %v2051_v52 }
  0xe8   : > { %791 = vmatpush.bf16.msra.mxu2 %v735_v47  ;;  %v2078_v7 = vsel %vm692_vm1, 1.0, %v674_v62 }
  0xe9   : > { %v545_v60 = vpop.f32.mrf.mxu2  ;;  %770 = vmatpush.bf16.msrb.mxu1 %v744_v55 }
  0xea   : > { %v2066_v61 = vpop.f32.mrf.mxu0  ;;  %v613_v45 = vmax.f32 %v545_v60, 0.0 }
  0xeb   : > { %1654 = vmatmul.msk.bf16.vlgmr.msra.gmra.mxu2 %vm476_vm0, %v2059_v56  ;;  %v579_v4 = vpop.f32.mrf.mxu3  ;;  %v610_v13 = vmax.f32 %v2066_v61, 0.0 }
  0xec   : > { %v634_v2 = vmax.f32 %v579_v4, 0.0  ;;  %v2126_v41 = vmul.f32 %v643_v28, %v613_v45 }
  0xed   : > { %771 = vmatpush.bf16.msrb.mxu1 %v739_v1 }
  0xee   : > { %v2086_v11 = vmul.f32 %v644_v51, %v634_v2  ;;  %v645_v51 = vperm.slane %v2017_v18, 4  ;;  %v736_v1 = vpack.c.bf16 %v2126_v41, %v2122_v53 }
  0xf0   : > { %v747_v16 = vpack.c.bf16 %v2086_v11, %v2078_v7 }
  0xf1   : > { %v548_v15 = vpop.f32.mrf.mxu2  ;;  %772 = vmatpush.bf16.msrb.mxu1 %v734_v10 }
  0xf2   : > { %v593_v17 = vpop.f32.mrf.mxu0  ;;  %v618_v33 = vmax.f32 %v548_v15, 0.0 }
  0xf3   : > { %v615_v4 = vmax.f32 %v593_v17, 0.0 }
  0xf4   : > { %1652 = vmatmul.msk.bf16.vlgmr.msrb.gmra.mxu1 %vm476_vm0, %v2059_v56  ;;  %v2115_v46 = vmul.f32 %v643_v28, %v618_v33 }
  0xf5   : > { %827 = vmatpush.bf16.msra.mxu1 %v747_v16  ;;  %v2145_v15 = vmul.f32 %v645_v51, %v615_v4  ;;  %v2151_v16 = vmul.f32 %v645_v51, %v610_v13 }
  0xf7   : > { %v738_v17 = vpack.c.bf16 %v2145_v15, %v2151_v16 }
  0xf9   : > { %828 = vmatpush.bf16.msra.mxu1 %v742_v20  ;;  %v550_v12 = vpop.f32.mrf.mxu2 }
  0xfa   : > { %v596_v24 = vpop.f32.mrf.mxu0  ;;  %v623_v36 = vmax.f32 %v550_v12, 0.0 }
  0xfb   : > { %1655 = vmatmul.msk.bf16.gmra.mxu2 %vm476_vm0, %v1757_v6  ;;  %v620_v63 = vmax.f32 %v596_v24, 0.0 }
  0xfc   : > { %v2119_v49 = vmul.f32 %v643_v28, %v623_v36 }
  0xfd   : > { %829 = vmatpush.bf16.msra.mxu1 %v737_v23  ;;  %v2143_v14 = vmul.f32 %v645_v51, %v620_v63 }
  0xfe   : > { %v741_v58 = vpack.c.bf16 %v2119_v49, %v2115_v46 }
 0x101   : > { %v553_v25 = vpop.f32.mrf.mxu2 }
 0x102   : > { %v598_v26 = vpop.f32.mrf.mxu0  ;;  %v628_v27 = vmax.f32 %v553_v25, 0.0 }
 0x103   : > { %v625_v60 = vmax.f32 %v598_v26, 0.0 }
 0x104   : > { %1653 = vmatmul.msk.bf16.gmra.mxu1 %vm476_vm0, %v1757_v6  ;;  %v673_v30 = vmul.f32 %v643_v28, %v628_v27 }
 0x105   : > { %v2138_v2 = vmul.f32 %v645_v51, %v625_v60 }
 0x106   : > { %v2110_v42 = vsel %vm692_vm1, 1.0, %v673_v30 }
 0x107   : > { %v743_v19 = vpack.c.bf16 %v2138_v2, %v2143_v14 }
 0x109   : > { %v555_v32 = vpop.f32.mrf.mxu2 }
 0x10a   : > { %v633_v37 = vmax.f32 %v555_v32, 0.0  ;;  %v601_v38 = vpop.f32.mrf.mxu0 }
 0x10b   : > { %v630_v47 = vmax.f32 %v601_v38, 0.0 }
 0x10c   : > { %v2112_v43 = vmul.f32 %v643_v28, %v633_v37 }
 0x10d   : > { %v675_v54 = vmul.f32 %v645_v51, %v630_v47  ;;  %v1758_v47 = vld [vmem:[%s2503_s4] sm:$0xff] }
 0x10e   : > { %v746_v48 = vpack.c.bf16 %v2112_v43, %v2110_v42 }
 0x10f   : > { %v2134_v18 = vsel %vm692_vm1, 1.0, %v675_v54 }
 0x110   : > { %808 = vmatpush.bf16.msrb.mxu3 %v746_v48 }
 0x112   : > { %v603_v55 = vpop.f32.mrf.mxu0 }
 0x113   : > { %v635_v62 = vmax.f32 %v603_v55, 0.0 }
 0x114   : > { %809 = vmatpush.bf16.msrb.mxu3 %v741_v58  ;;  %1658 = vmatmul.msk.bf16.vlgmr.msra.gmra.mxu1 %vm476_vm0, %v2059_v56  ;;  %v1759_v58 = vld [vmem:[%s2503_s4 + $0x8] sm:$0xff] }
 0x115   : > { %v2130_v0 = vmul.f32 %v645_v51, %v635_v62 }
 0x117   : > { %v748_v10 = vpack.c.bf16 %v2130_v0, %v2134_v18 }
 0x118   : > { %810 = vmatpush.bf16.msrb.mxu3 %v736_v1 }
 0x119   : > { %846 = vmatpush.bf16.msrb.mxu2 %v748_v10 }
 0x11b   : > { %1656 = vmatmul.msk.bf16.vlgmr.msrb.gmra.mxu3 %vm476_vm0, %v2059_v56 }
 0x11d   : > { %847 = vmatpush.bf16.msrb.mxu2 %v743_v19 }
 0x121   : > { %848 = vmatpush.bf16.msrb.mxu2 %v738_v17 }
 0x124   : > { %1659 = vmatmul.msk.bf16.gmra.mxu1 %vm476_vm0, %v1757_v6  ;;  %1660 = vmatmul.msk.bf16.vlgmr.msrb.gmra.mxu2 %vm476_vm0, %v2059_v56 }
 0x12b   : > { %1657 = vmatmul.msk.bf16.gmra.mxu3 %vm476_vm0, %v1757_v6 }
 0x134   : > { %1661 = vmatmul.msk.bf16.gmra.mxu2 %vm476_vm0, %v1757_v6 }
 0x16e   : > { %v793_v61 = vpop.f32.mrf.mxu2 }
 0x16f   : > { %v861_v30 = vmax.f32 %v793_v61, 0.0 }
 0x171   : > { %v774_v20 = vpop.f32.mrf.mxu1 }
 0x172   : > { %v860_v6 = vmax.f32 %v774_v20, 0.0  ;;  %v1760_v20 = vld [vmem:[%s2503_s4 + $0x10] sm:$0xff] }
 0x176   : > { %v795_v12 = vpop.f32.mrf.mxu2 }
 0x177   : > { %v866_v32 = vmax.f32 %v795_v12, 0.0 }
 0x179   : > { %v776_v23 = vpop.f32.mrf.mxu1  ;;  %v881_v45 = vpack.c.bf16 %v866_v32, %v861_v30 }
 0x17a   : > { %v865_v56 = vmax.f32 %v776_v23, 0.0 }
 0x17c   : > { %v880_v48 = vpack.c.bf16 %v865_v56, %v860_v6 }
 0x17e   : > { %v798_v24 = vpop.f32.mrf.mxu2 }
 0x17f   : > { %v871_v26 = vmax.f32 %v798_v24, 0.0 }
 0x181   : > { %v779_v25 = vpop.f32.mrf.mxu1 }
 0x182   : > { %v870_v37 = vmax.f32 %v779_v25, 0.0 }
 0x186   : > { %v800_v27 = vpop.f32.mrf.mxu2 }
 0x187   : > { %v876_v28 = vmax.f32 %v800_v27, 0.0 }
 0x189   : > { %v886_v33 = vpack.c.bf16 %v876_v28, %v871_v26  ;;  %v781_v36 = vpop.f32.mrf.mxu1 }
 0x18a   : > { %v875_v38 = vmax.f32 %v781_v36, 0.0 }
 0x18b   : > { %945 = vmatpush.bf16.msra.mxu0 %v886_v33 }
 0x18c   : > { %v885_v44 = vpack.c.bf16 %v875_v38, %v870_v37 }
 0x18e   : > { %921 = vmatpush.bf16.msra.mxu3 %v885_v44 }
 0x18f   : > { %946 = vmatpush.bf16.msra.mxu0 %v881_v45 }
 0x191   : > { %v831_v51 = vpop.f32.mrf.mxu1 }
 0x192   : > { %1677 = vmatmul.msk.bf16.vlgmr.msra.gmra.mxu0 %vm905_vm2, %v1758_v47  ;;  %922 = vmatpush.bf16.msra.mxu3 %v880_v48  ;;  %v863_v13 = vmax.f32 %v831_v51, 0.0 }
 0x195   : > { %1674 = vmatmul.msk.bf16.vlgmr.msra.gmra.mxu3 %vm905_vm2, %v1758_v47 }
 0x199   : > { %v833_v54 = vpop.f32.mrf.mxu1 }
 0x19a   : > { %v868_v19 = vmax.f32 %v833_v54, 0.0 }
 0x19c   : > { %v883_v23 = vpack.c.bf16 %v868_v19, %v863_v13 }
 0x19e   : > { %v812_v55 = vpop.f32.mrf.mxu3 }
 0x19f   : > { %v862_v28 = vmax.f32 %v812_v55, 0.0 }
 0x1a1   : > { %v836_v60 = vpop.f32.mrf.mxu1 }
 0x1a2   : > { %1678 = vmatmul.msk.bf16.gmra.mxu0 %vm905_vm2, %v1759_v58  ;;  %v873_v1 = vmax.f32 %v836_v60, 0.0 }
 0x1a5   : > { %1675 = vmatmul.msk.bf16.gmra.mxu3 %vm905_vm2, %v1759_v58 }
 0x1a6   : > { %v814_v62 = vpop.f32.mrf.mxu3 }
 0x1a7   : > { %v850_v63 = vpop.f32.mrf.mxu2  ;;  %v867_v30 = vmax.f32 %v814_v62, 0.0 }
 0x1a8   : > { %v864_v45 = vmax.f32 %v850_v63, 0.0 }
 0x1a9   : > { %v838_v4 = vpop.f32.mrf.mxu1  ;;  %v882_v33 = vpack.c.bf16 %v867_v30, %v862_v28 }
 0x1aa   : > { %v878_v10 = vmax.f32 %v838_v4, 0.0 }
 0x1ac   : > { %v888_v17 = vpack.c.bf16 %v878_v10, %v873_v1 }
 0x1ae   : > { %v817_v61 = vpop.f32.mrf.mxu3  ;;  %993 = vmatpush.bf16.msra.mxu2 %v888_v17 }
 0x1af   : > { %v852_v12 = vpop.f32.mrf.mxu2  ;;  %v872_v24 = vmax.f32 %v817_v61, 0.0 }
 0x1b0   : > { %v869_v56 = vmax.f32 %v852_v12, 0.0 }
 0x1b2   : > { %1679 = vmatmul.msk.bf16.gmra.mxu0 %vm905_vm2, %v1760_v20  ;;  %994 = vmatpush.bf16.msra.mxu2 %v883_v23  ;;  %v884_v6 = vpack.c.bf16 %v869_v56, %v864_v45 }
 0x1b5   : > { %1676 = vmatmul.msk.bf16.gmra.mxu3 %vm905_vm2, %v1760_v20  ;;  %1683 = vmatmul.msk.bf16.vlgmr.msra.gmra.mxu2 %vm905_vm2, %v1758_v47 }
 0x1b6   : > { %v819_v25 = vpop.f32.mrf.mxu3 }
 0x1b7   : > { %v877_v26 = vmax.f32 %v819_v25, 0.0  ;;  %v855_v27 = vpop.f32.mrf.mxu2 }
 0x1b8   : > { %v874_v37 = vmax.f32 %v855_v27, 0.0 }
 0x1b9   : > { %v887_v32 = vpack.c.bf16 %v877_v26, %v872_v24 }
 0x1bb   : > { %969 = vmatpush.bf16.msrb.mxu1 %v887_v32 }
 0x1bf   : > { %970 = vmatpush.bf16.msrb.mxu1 %v882_v33  ;;  %v857_v36 = vpop.f32.mrf.mxu2 }
 0x1c0   : > { %v879_v38 = vmax.f32 %v857_v36, 0.0 }
 0x1c2   : > { %v889_v44 = vpack.c.bf16 %v879_v38, %v874_v37  ;;  %1680 = vmatmul.msk.bf16.vlgmr.msrb.gmra.mxu1 %vm905_vm2, %v1758_v47 }
 0x1c4   : > { %1017 = vmatpush.bf16.msrb.mxu3 %v889_v44 }
 0x1c5   : > { %1684 = vmatmul.msk.bf16.gmra.mxu2 %vm905_vm2, %v1759_v58 }
 0x1c8   : > { %1018 = vmatpush.bf16.msrb.mxu3 %v884_v6 }
 0x1cb   : > { %1686 = vmatmul.msk.bf16.vlgmr.msrb.gmra.mxu3 %vm905_vm2, %v1758_v47 }
 0x1d2   : > { %1681 = vmatmul.msk.bf16.gmra.mxu1 %vm905_vm2, %v1759_v58 }
 0x1d5   : > { %1685 = vmatmul.msk.bf16.gmra.mxu2 %vm905_vm2, %v1760_v20 }
 0x1db   : > { %1687 = vmatmul.msk.bf16.gmra.mxu3 %vm905_vm2, %v1759_v58 }
 0x1e2   : > { %1682 = vmatmul.msk.bf16.gmra.mxu1 %vm905_vm2, %v1760_v20 }
 0x1eb   : > { %1688 = vmatmul.msk.bf16.gmra.mxu3 %vm905_vm2, %v1760_v20 }
 0x20f   : > { %v948_v48 = vpop.f32.mrf.mxu0 }
 0x210   : > { %v2199_v25 = vadd.f32 %v948_v48, %v2036_v39 }
 0x212   : > { %v1036_v32 = vmax.f32 %v2199_v25, 0.0 }
 0x217   : > { %v950_v51 = vpop.f32.mrf.mxu0 }
 0x218   : > { %v924_v54 = vpop.f32.mrf.mxu3  ;;  %v2195_v23 = vadd.f32 %v950_v51, %v2038_v40 }
 0x21f   : > { %v953_v55 = vpop.f32.mrf.mxu0 }
 0x220   : > { %v926_v60 = vpop.f32.mrf.mxu3  ;;  %v2192_v61 = vadd.f32 %v953_v55, %v2029_v34  ;;  %v1041_v34 = vmax.f32 %v2195_v23, 0.0 }
 0x221   : > { %v2223_v38 = vadd.f32 %v926_v60, %v2072_v3 }
 0x222   : > { %v1076_v37 = vpack.c.bf16 %v1041_v34, %v1036_v32 }
 0x223   : > { %v1040_v3 = vmax.f32 %v2223_v38, 0.0 }
 0x227   : > { %v955_v62 = vpop.f32.mrf.mxu0 }
 0x228   : > { %v929_v63 = vpop.f32.mrf.mxu3  ;;  %v2186_v13 = vadd.f32 %v955_v62, %v2031_v35  ;;  %v1046_v35 = vmax.f32 %v2192_v61, 0.0  ;;  %v2254_v62 = vld [vmem:[%s2504_s5 + $0x8] sm:$0xff] }
 0x22a   : > { %v1051_v24 = vmax.f32 %v2186_v13, 0.0 }
 0x22c   : > { %v1081_v40 = vpack.c.bf16 %v1051_v24, %v1046_v35 }
 0x22f   : > { %v958_v1 = vpop.f32.mrf.mxu0 }
 0x230   : > { %v931_v4 = vpop.f32.mrf.mxu3  ;;  %v959_v47 = vadd.f32 %v958_v1, %v2025_v29 }
 0x231   : > { %v2211_v30 = vadd.f32 %v931_v4, %v2061_v57 }
 0x232   : > { %v1056_v20 = vmax.f32 %v959_v47, 0.0 }
 0x233   : > { %v1050_v57 = vmax.f32 %v2211_v30, 0.0 }
 0x237   : > { %v960_v10 = vpop.f32.mrf.mxu0 }
 0x238   : > { %v961_v58 = vadd.f32 %v960_v10, %v2027_v31  ;;  %v934_v19 = vpop.f32.mrf.mxu3  ;;  %v2189_v17 = vpop.f32.mrf.mxu2 }
 0x239   : > { %v935_v31 = vadd.f32 %v934_v19, %v2051_v52  ;;  %v2216_v52 = vadd.f32 %v929_v63, %v2064_v59  ;;  %v2232_v59 = vadd.f32 %v924_v54, %v2074_v5 }
 0x23a   : > { %v1061_v12 = vmax.f32 %v961_v58, 0.0 }
 0x23b   : > { %v1055_v33 = vmax.f32 %v935_v31, 0.0  ;;  %v1045_v44 = vmax.f32 %v2216_v52, 0.0  ;;  %v1035_v51 = vmax.f32 %v2232_v59, 0.0 }
 0x23c   : > { %v1086_v29 = vpack.c.bf16 %v1061_v12, %v1056_v20 }
 0x23d   : > { %v1080_v48 = vpack.c.bf16 %v1050_v57, %v1045_v44  ;;  %v1075_v5 = vpack.c.bf16 %v1040_v3, %v1035_v51 }
 0x23e   : > { %1130 = vmatpush.bf16.msra.mxu1 %v1086_v29 }
 0x23f   : > { %v2203_v26 = vpop.f32.mrf.mxu1 }
 0x240   : > { %v936_v27 = vpop.f32.mrf.mxu3  ;;  %v998_v28 = vpop.f32.mrf.mxu2 }
 0x241   : > { %v937_v39 = vadd.f32 %v936_v27, %v2046_v50  ;;  %v2229_v50 = vld [vmem:[%s2504_s5] sm:$0xff]  ;;  %v2269_v27 = vadd.f32 %v998_v28, %v2098_v22 }
 0x242   : > { %1131 = vmatpush.bf16.msra.mxu1 %v1081_v40 }
 0x243   : > { %v1060_v36 = vmax.f32 %v937_v39, 0.0  ;;  %v1043_v28 = vmax.f32 %v2269_v27, 0.0 }
 0x245   : > { %v1085_v56 = vpack.c.bf16 %v1060_v36, %v1055_v33 }
 0x246   : > { %1132 = vmatpush.bf16.msra.mxu1 %v1076_v37 }
 0x247   : > { %v974_v45 = vpop.f32.mrf.mxu1  ;;  %1111 = vmatpush.bf16.msrb.mxu0 %v1085_v56 }
 0x248   : > { %v1001_v6 = vpop.f32.mrf.mxu2 }
 0x249   : > { %1699 = vmatmul.msk.bf16.vlgmr.msra.gmra.mxu1 %vm476_vm0, %v2229_v50  ;;  %v2266_v29 = vadd.f32 %v1001_v6, %v2080_v8 }
 0x24b   : > { %1112 = vmatpush.bf16.msrb.mxu0 %v1080_v48  ;;  %v1048_v36 = vmax.f32 %v2266_v29, 0.0 }
 0x24e   : > { %v2247_v54 = vpop.f32.mrf.mxu3 }
 0x24f   : > { %v977_v55 = vpop.f32.mrf.mxu1  ;;  %1113 = vmatpush.bf16.msrb.mxu0 %v1075_v5 }
 0x250   : > { %v1003_v60 = vpop.f32.mrf.mxu2  ;;  %v2288_v56 = vadd.f32 %v977_v55, %v2115_v46  ;;  %v2301_v46 = vadd.f32 %v2203_v26, %v2122_v53 }
 0x251   : > { %v2260_v20 = vadd.f32 %v1003_v60, %v2082_v9 }
 0x252   : > { %1697 = vmatmul.msk.bf16.vlgmr.msrb.gmra.mxu0 %vm476_vm0, %v2229_v50  ;;  %v1047_v55 = vmax.f32 %v2288_v56, 0.0 }
 0x256   : > { %v1022_v63 = vpop.f32.mrf.mxu3 }
 0x257   : > { %v979_v1 = vpop.f32.mrf.mxu1 }
 0x258   : > { %v1006_v4 = vpop.f32.mrf.mxu2  ;;  %v2279_v8 = vadd.f32 %v979_v1, %v2119_v49  ;;  %v2292_v49 = vadd.f32 %v974_v45, %v2126_v41  ;;  %v1037_v1 = vmax.f32 %v2301_v46, 0.0 }
 0x259   : > { %1700 = vmatmul.msk.bf16.gmra.mxu1 %vm476_vm0, %v2254_v62  ;;  %v1007_v10 = vadd.f32 %v1006_v4, %v2078_v7  ;;  %v1053_v7 = vmax.f32 %v2260_v20, 0.0 }
 0x25a   : > { %v1042_v41 = vmax.f32 %v2292_v49, 0.0 }
 0x25b   : > { %v1058_v31 = vmax.f32 %v1007_v10, 0.0 }
 0x25c   : > { %v1077_v53 = vpack.c.bf16 %v1042_v41, %v1037_v1 }
 0x25e   : > { %v1025_v47 = vpop.f32.mrf.mxu3 }
 0x25f   : > { %v982_v58 = vpop.f32.mrf.mxu1 }
 0x260   : > { %v1008_v19 = vpop.f32.mrf.mxu2  ;;  %v983_v33 = vadd.f32 %v982_v58, %v2110_v42  ;;  %v1083_v42 = vpack.c.bf16 %v1053_v7, %v1048_v36 }
 0x261   : > { %v1009_v12 = vadd.f32 %v1008_v19, %v2086_v11  ;;  %v2275_v11 = vadd.f32 %v2189_v17, %v2096_v21  ;;  %v2322_v19 = vadd.f32 %v1025_v47, %v2143_v14 }
 0x262   : > { %1698 = vmatmul.msk.bf16.gmra.mxu0 %vm476_vm0, %v2254_v62  ;;  %v1057_v21 = vmax.f32 %v983_v33, 0.0 }
 0x263   : > { %v1063_v40 = vmax.f32 %v1009_v12, 0.0  ;;  %v1038_v6 = vmax.f32 %v2275_v11, 0.0 }
 0x265   : > { %v1088_v39 = vpack.c.bf16 %v1063_v40, %v1058_v31  ;;  %v1078_v5 = vpack.c.bf16 %v1043_v28, %v1038_v6  ;;  %v2327_v40 = vadd.f32 %v1022_v63, %v2145_v15 }
 0x266   : > { %v1027_v9 = vpop.f32.mrf.mxu3 }
 0x267   : > { %v984_v37 = vpop.f32.mrf.mxu1  ;;  %1168 = vmatpush.bf16.msra.mxu0 %v1088_v39  ;;  %v2318_v10 = vadd.f32 %v1027_v9, %v2138_v2  ;;  %v2332_v2 = vadd.f32 %v2247_v54, %v2151_v16  ;;  %v1044_v14 = vmax.f32 %v2327_v40, 0.0 }
 0x268   : > { %v985_v22 = vadd.f32 %v984_v37, %v2112_v43  ;;  %v1052_v43 = vmax.f32 %v2279_v8, 0.0 }
 0x269   : > { %v1039_v15 = vmax.f32 %v2332_v2, 0.0 }
 0x26a   : > { %v1062_v17 = vmax.f32 %v985_v22, 0.0  ;;  %v1082_v45 = vpack.c.bf16 %v1052_v43, %v1047_v55 }
 0x26b   : > { %1169 = vmatpush.bf16.msra.mxu0 %v1083_v42  ;;  %v1079_v16 = vpack.c.bf16 %v1044_v14, %v1039_v15 }
 0x26c   : > { %v1087_v48 = vpack.c.bf16 %v1062_v17, %v1057_v21 }
 0x26e   : > { %1149 = vmatpush.bf16.msrb.mxu2 %v1087_v48  ;;  %v1030_v60 = vpop.f32.mrf.mxu3 }
 0x26f   : > { %1170 = vmatpush.bf16.msra.mxu0 %v1078_v5  ;;  %v1031_v26 = vadd.f32 %v1030_v60, %v2134_v18  ;;  %v1054_v18 = vmax.f32 %v2318_v10, 0.0 }
 0x271   : > { %v1059_v12 = vmax.f32 %v1031_v26, 0.0 }
 0x272   : > { %1150 = vmatpush.bf16.msrb.mxu2 %v1082_v45  ;;  %1703 = vmatmul.msk.bf16.vlgmr.msra.gmra.mxu0 %vm476_vm0, %v2229_v50 }
 0x276   : > { %1151 = vmatpush.bf16.msrb.mxu2 %v1077_v53  ;;  %v1032_v4 = vpop.f32.mrf.mxu3  ;;  %v1763_v53 = vld [vmem:[%s2505_s6] sm:$0xff] }
 0x277   : > { %v1033_v58 = vadd.f32 %v1032_v4, %v2130_v0  ;;  %v1049_v0 = vmax.f32 %v2322_v19, 0.0 }
 0x279   : > { %v1064_v31 = vmax.f32 %v1033_v58, 0.0  ;;  %1701 = vmatmul.msk.bf16.vlgmr.msrb.gmra.mxu2 %vm476_vm0, %v2229_v50  ;;  %v1084_v47 = vpack.c.bf16 %v1054_v18, %v1049_v0 }
 0x27b   : > { %v1089_v39 = vpack.c.bf16 %v1064_v31, %v1059_v12 }
 0x27d   : > { %1187 = vmatpush.bf16.msra.mxu3 %v1089_v39 }
 0x281   : > { %1188 = vmatpush.bf16.msra.mxu3 %v1084_v47  ;;  %v1764_v47 = vld [vmem:[%s2505_s6 + $0x8] sm:$0xff] }
 0x282   : > { %1704 = vmatmul.msk.bf16.gmra.mxu0 %vm476_vm0, %v2254_v62 }
 0x285   : > { %1189 = vmatpush.bf16.msra.mxu3 %v1079_v16 }
 0x288   : > { %1705 = vmatmul.msk.bf16.vlgmr.msra.gmra.mxu3 %vm476_vm0, %v2229_v50 }
 0x289   : > { %1702 = vmatmul.msk.bf16.gmra.mxu2 %vm476_vm0, %v2254_v62 }
 0x298   : > { %1706 = vmatmul.msk.bf16.gmra.mxu3 %vm476_vm0, %v2254_v62 }
 0x2c6   : > { %v1134_v54 = vpop.f32.mrf.mxu1 }
 0x2c7   : > { %v1202_v21 = vmax.f32 %v1134_v54, 0.0 }
 0x2ce   : > { %v1136_v63 = vpop.f32.mrf.mxu1 }
 0x2cf   : > { %v1115_v33 = vpop.f32.mrf.mxu0  ;;  %v1207_v17 = vmax.f32 %v1136_v63, 0.0 }
 0x2d0   : > { %v1201_v4 = vmax.f32 %v1115_v33, 0.0 }
 0x2d1   : > { %v1222_v45 = vpack.c.bf16 %v1207_v17, %v1202_v21 }
 0x2d6   : > { %v1139_v9 = vpop.f32.mrf.mxu1 }
 0x2d7   : > { %v1117_v37 = vpop.f32.mrf.mxu0  ;;  %v1212_v22 = vmax.f32 %v1139_v9, 0.0 }
 0x2d8   : > { %v1206_v58 = vmax.f32 %v1117_v37, 0.0 }
 0x2da   : > { %v1221_v31 = vpack.c.bf16 %v1206_v58, %v1201_v4 }
 0x2de   : > { %v1141_v42 = vpop.f32.mrf.mxu1 }
 0x2df   : > { %v1217_v48 = vmax.f32 %v1141_v42, 0.0  ;;  %v1120_v5 = vpop.f32.mrf.mxu0  ;;  %v1765_v42 = vld [vmem:[%s2505_s6 + $0x10] sm:$0xff] }
 0x2e0   : > { %v1211_v50 = vmax.f32 %v1120_v5, 0.0 }
 0x2e1   : > { %v1227_v60 = vpack.c.bf16 %v1217_v48, %v1212_v22 }
 0x2e3   : > { %1283 = vmatpush.bf16.msra.mxu2 %v1227_v60 }
 0x2e7   : > { %1284 = vmatpush.bf16.msra.mxu2 %v1222_v45  ;;  %v1122_v62 = vpop.f32.mrf.mxu0 }
 0x2e8   : > { %v1216_v26 = vmax.f32 %v1122_v62, 0.0 }
 0x2ea   : > { %v1226_v12 = vpack.c.bf16 %v1216_v26, %v1211_v50  ;;  %1722 = vmatmul.msk.bf16.vlgmr.msra.gmra.mxu2 %vm905_vm2, %v1763_v53 }
 0x2ec   : > { %1261 = vmatpush.bf16.msrb.mxu1 %v1226_v12 }
 0x2ef   : > { %v1172_v39 = vpop.f32.mrf.mxu0 }
 0x2f0   : > { %1262 = vmatpush.bf16.msrb.mxu1 %v1221_v31  ;;  %v1204_v21 = vmax.f32 %v1172_v39, 0.0 }
 0x2f3   : > { %1719 = vmatmul.msk.bf16.vlgmr.msrb.gmra.mxu1 %vm905_vm2, %v1763_v53 }
 0x2f7   : > { %v1174_v16 = vpop.f32.mrf.mxu0 }
 0x2f8   : > { %v1209_v17 = vmax.f32 %v1174_v16, 0.0 }
 0x2fa   : > { %1723 = vmatmul.msk.bf16.gmra.mxu2 %vm905_vm2, %v1764_v47  ;;  %v1224_v45 = vpack.c.bf16 %v1209_v17, %v1204_v21 }
 0x2fc   : > { %v1153_v54 = vpop.f32.mrf.mxu2 }
 0x2fd   : > { %v1203_v58 = vmax.f32 %v1153_v54, 0.0 }
 0x2ff   : > { %v1177_v63 = vpop.f32.mrf.mxu0 }
 0x300   : > { %v1214_v9 = vmax.f32 %v1177_v63, 0.0 }
 0x303   : > { %1720 = vmatmul.msk.bf16.gmra.mxu1 %vm905_vm2, %v1764_v47 }
 0x304   : > { %v1155_v33 = vpop.f32.mrf.mxu2 }
 0x305   : > { %v1208_v12 = vmax.f32 %v1155_v33, 0.0 }
 0x307   : > { %v1179_v37 = vpop.f32.mrf.mxu0  ;;  %v1223_v39 = vpack.c.bf16 %v1208_v12, %v1203_v58 }
 0x308   : > { %v1219_v22 = vmax.f32 %v1179_v37, 0.0 }
 0x30a   : > { %v1229_v48 = vpack.c.bf16 %v1219_v22, %v1214_v9  ;;  %1724 = vmatmul.msk.bf16.gmra.mxu2 %vm905_vm2, %v1765_v42 }
 0x30b   : > { %v1191_v5 = vpop.f32.mrf.mxu3 }
 0x30c   : > { %v1158_v60 = vpop.f32.mrf.mxu2  ;;  %1327 = vmatpush.bf16.msrb.mxu3 %v1229_v48  ;;  %v1205_v17 = vmax.f32 %v1191_v5, 0.0 }
 0x30d   : > { %v1213_v50 = vmax.f32 %v1158_v60, 0.0 }
 0x310   : > { %1328 = vmatpush.bf16.msrb.mxu3 %v1224_v45 }
 0x313   : > { %v1193_v62 = vpop.f32.mrf.mxu3  ;;  %1728 = vmatmul.msk.bf16.vlgmr.msrb.gmra.mxu3 %vm905_vm2, %v1763_v53  ;;  %1721 = vmatmul.msk.bf16.gmra.mxu1 %vm905_vm2, %v1765_v42 }
 0x314   : > { %v1160_v26 = vpop.f32.mrf.mxu2  ;;  %v1210_v22 = vmax.f32 %v1193_v62, 0.0 }
 0x315   : > { %v1218_v4 = vmax.f32 %v1160_v26, 0.0 }
 0x316   : > { %v1225_v48 = vpack.c.bf16 %v1210_v22, %v1205_v17 }
 0x317   : > { %v1228_v31 = vpack.c.bf16 %v1218_v4, %v1213_v50 }
 0x319   : > { %1305 = vmatpush.bf16.msrb.mxu0 %v1228_v31 }
 0x31b   : > { %v1196_v16 = vpop.f32.mrf.mxu3 }
 0x31c   : > { %v1215_v9 = vmax.f32 %v1196_v16, 0.0 }
 0x31d   : > { %1306 = vmatpush.bf16.msrb.mxu0 %v1223_v39 }
 0x320   : > { %1725 = vmatmul.msk.bf16.vlgmr.msrb.gmra.mxu0 %vm905_vm2, %v1763_v53 }
 0x323   : > { %v1198_v63 = vpop.f32.mrf.mxu3  ;;  %1729 = vmatmul.msk.bf16.gmra.mxu3 %vm905_vm2, %v1764_v47 }
 0x324   : > { %v1220_v37 = vmax.f32 %v1198_v63, 0.0 }
 0x326   : > { %v1230_v21 = vpack.c.bf16 %v1220_v37, %v1215_v9 }
 0x328   : > { %1349 = vmatpush.bf16.msra.mxu1 %v1230_v21 }
 0x32c   : > { %1350 = vmatpush.bf16.msra.mxu1 %v1225_v48 }
 0x32f   : > { %1731 = vmatmul.msk.bf16.vlgmr.msra.gmra.mxu1 %vm905_vm2, %v1763_v53 }
 0x330   : > { %1726 = vmatmul.msk.bf16.gmra.mxu0 %vm905_vm2, %v1764_v47 }
 0x333   : > { %1730 = vmatmul.msk.bf16.gmra.mxu3 %vm905_vm2, %v1765_v42 }
 0x33f   : > { %1732 = vmatmul.msk.bf16.gmra.mxu1 %vm905_vm2, %v1764_v47 }
 0x340   : > { %1727 = vmatmul.msk.bf16.gmra.mxu0 %vm905_vm2, %v1765_v42 }
 0x34f   : > { %1733 = vmatmul.msk.bf16.gmra.mxu1 %vm905_vm2, %v1765_v42 }
 0x36d   : > { %v1286_v54 = vpop.f32.mrf.mxu2 }
 0x36e   : > { %v1287_v33 = vadd.f32 %v1286_v54, %v1036_v32 }
 0x370   : > { %v1366_v5 = vmax.f32 %v1287_v33, 0.0  ;;  %v1264_v60 = vpop.f32.mrf.mxu1 }
 0x371   : > { %v1265_v53 = vadd.f32 %v1264_v60, %v1035_v51 }
 0x372   : > { %1386 = vst [vmem:[%s2383_s19 + $0x8] sm:$0xff] %v1366_v5 }
 0x373   : > { %v1365_v47 = vmax.f32 %v1265_v53, 0.0 }
 0x375   : > { %1385 = vst [vmem:[%s2383_s19] sm:$0xff] %v1365_v47  ;;  %v1288_v42 = vpop.f32.mrf.mxu2 }
 0x376   : > { %v1289_v25 = vadd.f32 %v1288_v42, %v1041_v34 }
 0x378   : > { %v1371_v32 = vmax.f32 %v1289_v25, 0.0  ;;  %v1266_v45 = vpop.f32.mrf.mxu1 }
 0x379   : > { %v1267_v59 = vadd.f32 %v1266_v45, %v1040_v3  ;;  %v1429_v19 = vld [vmem:[%s2383_s19 + $0x8] sm:$0xff] (%p1894_p5) }
 0x37a   : > { %1391 = vst [vmem:[%s2383_s19 + $0x30] sm:$0xff] %v1371_v32 }
 0x37b   : > { %v1370_v51 = vmax.f32 %v1267_v59, 0.0  ;;  %1430 = vst [vmem:[%s2449_s21 + $0x8] sm:$0xff] (%p1894_p5), %v1429_v19 }
 0x37c   : > { %v1427_v10 = vld [vmem:[%s2383_s19] sm:$0xff] (%p1894_p5) }
 0x37d   : > { %1390 = vst [vmem:[%s2383_s19 + $0x28] sm:$0xff] %v1370_v51  ;;  %v1291_v50 = vpop.f32.mrf.mxu2 }
 0x37e   : > { %v1292_v62 = vadd.f32 %v1291_v50, %v1046_v35  ;;  %1428 = vst [vmem:[%s2449_s21] sm:$0xff] (%p1894_p5), %v1427_v10 }
 0x380   : > { %v1376_v26 = vmax.f32 %v1292_v62, 0.0  ;;  %v1269_v4 = vpop.f32.mrf.mxu1 }
 0x381   : > { %v1270_v23 = vadd.f32 %v1269_v4, %v1045_v44  ;;  %v1439_v50 = vld [vmem:[%s2383_s19 + $0x30] sm:$0xff] (%p1894_p5) }
 0x382   : > { %1396 = vst [vmem:[%s2383_s19 + $0x58] sm:$0xff] %v1376_v26 }
 0x383   : > { %v1375_v34 = vmax.f32 %v1270_v23, 0.0  ;;  %1440 = vst [vmem:[%s2449_s21 + $0x58] sm:$0xff] (%p1894_p5), %v1439_v50 }
 0x384   : > { %v1437_v51 = vld [vmem:[%s2383_s19 + $0x28] sm:$0xff] (%p1894_p5) }
 0x385   : > { %1395 = vst [vmem:[%s2383_s19 + $0x50] sm:$0xff] %v1375_v34  ;;  %v1293_v38 = vpop.f32.mrf.mxu2 }
 0x386   : > { %v1294_v3 = vadd.f32 %v1293_v38, %v1051_v24  ;;  %1438 = vst [vmem:[%s2449_s21 + $0x50] sm:$0xff] (%p1894_p5), %v1437_v51 }
 0x388   : > { %v1381_v58 = vmax.f32 %v1294_v3, 0.0  ;;  %v1271_v12 = vpop.f32.mrf.mxu1 }
 0x389   : > { %v1272_v31 = vadd.f32 %v1271_v12, %v1050_v57  ;;  %v1449_v34 = vld [vmem:[%s2383_s19 + $0x58] sm:$0xff] (%p1894_p5) }
 0x38a   : > { %1401 = vst [vmem:[%s2383_s19 + $0x80] sm:$0xff] %v1381_v58 }
 0x38b   : > { %v1380_v61 = vmax.f32 %v1272_v31, 0.0  ;;  %1450 = vst [vmem:[%s2449_s21 + $0xa8] sm:$0xff] (%p1894_p5), %v1449_v34 }
 0x38c   : > { %v1447_v23 = vld [vmem:[%s2383_s19 + $0x50] sm:$0xff] (%p1894_p5) }
 0x38d   : > { %1400 = vst [vmem:[%s2383_s19 + $0x78] sm:$0xff] %v1380_v61  ;;  %v1296_v35 = vpop.f32.mrf.mxu2 }
 0x38e   : > { %1448 = vst [vmem:[%s2449_s21 + $0xa0] sm:$0xff] (%p1894_p5), %v1447_v23 }
 0x390   : > { %v1274_v52 = vpop.f32.mrf.mxu1 }
 0x391   : > { %v1459_v31 = vld [vmem:[%s2383_s19 + $0x80] sm:$0xff] (%p1894_p5) }
 0x392   : > { %1460 = vst [vmem:[%s2449_s21 + $0xf8] sm:$0xff] (%p1894_p5), %v1459_v31 }
 0x394   : > { %v1457_v12 = vld [vmem:[%s2383_s19 + $0x78] sm:$0xff] (%p1894_p5) }
 0x395   : > { %v1297_v44 = vpop.f32.mrf.mxu2  ;;  %1458 = vst [vmem:[%s2449_s21 + $0xf0] sm:$0xff] (%p1894_p5), %v1457_v12 }
 0x396   : > { %v1330_v39 = vpop.f32.mrf.mxu3 }
 0x397   : > { %v1331_v16 = vadd.f32 %v1330_v39, %v1038_v6 }
 0x398   : > { %v1275_v63 = vpop.f32.mrf.mxu1 }
 0x399   : > { %v1368_v13 = vmax.f32 %v1331_v16, 0.0 }
 0x39b   : > { %1388 = vst [vmem:[%s2383_s19 + $0x18] sm:$0xff] %v1368_v13 }
 0x39d   : > { %v1308_v24 = vpop.f32.mrf.mxu0 }
 0x39e   : > { %v1309_v30 = vadd.f32 %v1308_v24, %v1037_v1  ;;  %v1332_v57 = vpop.f32.mrf.mxu3 }
 0x39f   : > { %v1333_v9 = vadd.f32 %v1332_v57, %v1043_v28 }
 0x3a0   : > { %v1367_v37 = vmax.f32 %v1309_v30, 0.0 }
 0x3a1   : > { %v1373_v22 = vmax.f32 %v1333_v9, 0.0 }
 0x3a2   : > { %1387 = vst [vmem:[%s2383_s19 + $0x10] sm:$0xff] %v1367_v37 }
 0x3a3   : > { %1393 = vst [vmem:[%s2383_s19 + $0x40] sm:$0xff] %v1373_v22 }
 0x3a5   : > { %v1310_v21 = vpop.f32.mrf.mxu0 }
 0x3a6   : > { %v1311_v11 = vadd.f32 %v1310_v21, %v1042_v41  ;;  %v1335_v6 = vpop.f32.mrf.mxu3 }
 0x3a7   : > { %v1336_v17 = vadd.f32 %v1335_v6, %v1048_v36 }
 0x3a8   : > { %v1372_v46 = vmax.f32 %v1311_v11, 0.0 }
 0x3a9   : > { %v1378_v1 = vmax.f32 %v1336_v17, 0.0 }
 0x3aa   : > { %1392 = vst [vmem:[%s2383_s19 + $0x38] sm:$0xff] %v1372_v46  ;;  %v1443_v26 = vld [vmem:[%s2383_s19 + $0x40] sm:$0xff] (%p1894_p5) }
 0x3ab   : > { %1398 = vst [vmem:[%s2383_s19 + $0x68] sm:$0xff] %v1378_v1 }
 0x3ac   : > { %v1352_v27 = vpop.f32.mrf.mxu1  ;;  %1444 = vst [vmem:[%s2449_s21 + $0x68] sm:$0xff] (%p1894_p5), %v1443_v26 }
 0x3ad   : > { %v1313_v28 = vpop.f32.mrf.mxu0  ;;  %v1353_v48 = vadd.f32 %v1352_v27, %v1039_v15 }
 0x3ae   : > { %v1314_v49 = vadd.f32 %v1313_v28, %v1047_v55  ;;  %v1337_v41 = vpop.f32.mrf.mxu3 }
 0x3af   : > { %v1369_v54 = vmax.f32 %v1353_v48, 0.0  ;;  %v1338_v29 = vadd.f32 %v1337_v41, %v1053_v7 }
 0x3b0   : > { %v1377_v36 = vmax.f32 %v1314_v49, 0.0 }
 0x3b1   : > { %1389 = vst [vmem:[%s2383_s19 + $0x20] sm:$0xff] %v1369_v54  ;;  %v1383_v33 = vmax.f32 %v1338_v29, 0.0  ;;  %v1441_v62 = vld [vmem:[%s2383_s19 + $0x38] sm:$0xff] (%p1894_p5) }
 0x3b2   : > { %1397 = vst [vmem:[%s2383_s19 + $0x60] sm:$0xff] %v1377_v36  ;;  %v1453_v3 = vld [vmem:[%s2383_s19 + $0x68] sm:$0xff] (%p1894_p5) }
 0x3b3   : > { %1403 = vst [vmem:[%s2383_s19 + $0x90] sm:$0xff] %v1383_v33 }
 0x3b4   : > { %v1354_v5 = vpop.f32.mrf.mxu1  ;;  %1442 = vst [vmem:[%s2449_s21 + $0x60] sm:$0xff] (%p1894_p5), %v1441_v62 }
 0x3b5   : > { %v1315_v60 = vpop.f32.mrf.mxu0  ;;  %v1355_v2 = vadd.f32 %v1354_v5, %v1044_v14  ;;  %1454 = vst [vmem:[%s2449_s21 + $0xb8] sm:$0xff] (%p1894_p5), %v1453_v3 }
 0x3b6   : > { %v1316_v56 = vadd.f32 %v1315_v60, %v1052_v43  ;;  %v1340_v55 = vpop.f32.mrf.mxu3 }
 0x3b7   : > { %v1374_v15 = vmax.f32 %v1355_v2, 0.0 }
 0x3b8   : > { %v1382_v53 = vmax.f32 %v1316_v56, 0.0  ;;  %v1435_v59 = vld [vmem:[%s2383_s19 + $0x20] sm:$0xff] (%p1894_p5) }
 0x3b9   : > { %1394 = vst [vmem:[%s2383_s19 + $0x48] sm:$0xff] %v1374_v15  ;;  %v1451_v38 = vld [vmem:[%s2383_s19 + $0x60] sm:$0xff] (%p1894_p5) }
 0x3ba   : > { %1402 = vst [vmem:[%s2383_s19 + $0x88] sm:$0xff] %v1382_v53  ;;  %v1463_v35 = vld [vmem:[%s2383_s19 + $0x90] sm:$0xff] (%p1894_p5) }
 0x3bb   : > { %1436 = vst [vmem:[%s2449_s21 + $0x20] sm:$0xff] (%p1894_p5), %v1435_v59 }
 0x3bc   : > { %v1357_v20 = vpop.f32.mrf.mxu1  ;;  %1452 = vst [vmem:[%s2449_s21 + $0xb0] sm:$0xff] (%p1894_p5), %v1451_v38 }
 0x3bd   : > { %v1358_v7 = vadd.f32 %v1357_v20, %v1049_v0  ;;  %v1318_v47 = vpop.f32.mrf.mxu0  ;;  %v1433_v0 = vld [vmem:[%s2383_s19 + $0x18] sm:$0xff] (%p1894_p5)  ;;  %1464 = vst [vmem:[%s2449_s21 + $0x108] sm:$0xff] (%p1894_p5), %v1463_v35 }
 0x3be   : > { %v1341_v42 = vpop.f32.mrf.mxu3  ;;  %1434 = vst [vmem:[%s2449_s21 + $0x18] sm:$0xff] (%p1894_p5), %v1433_v0 }
 0x3bf   : > { %v1379_v25 = vmax.f32 %v1358_v7, 0.0 }
 0x3c0   : > { %v1445_v4 = vld [vmem:[%s2383_s19 + $0x48] sm:$0xff] (%p1894_p5) }
 0x3c1   : > { %1399 = vst [vmem:[%s2383_s19 + $0x70] sm:$0xff] %v1379_v25  ;;  %v1461_v61 = vld [vmem:[%s2383_s19 + $0x88] sm:$0xff] (%p1894_p5) }
 0x3c2   : > { %1446 = vst [vmem:[%s2449_s21 + $0x70] sm:$0xff] (%p1894_p5), %v1445_v4 }
 0x3c3   : > { %1462 = vst [vmem:[%s2449_s21 + $0x100] sm:$0xff] (%p1894_p5), %v1461_v61 }
 0x3c4   : > { %v1359_v32 = vpop.f32.mrf.mxu1 }
 0x3c5   : > { %v1360_v40 = vadd.f32 %v1359_v32, %v1054_v18  ;;  %v1319_v8 = vpop.f32.mrf.mxu0  ;;  %v1431_v18 = vld [vmem:[%s2383_s19 + $0x10] sm:$0xff] (%p1894_p5) }
 0x3c6   : > { %1432 = vst [vmem:[%s2449_s21 + $0x10] sm:$0xff] (%p1894_p5), %v1431_v18 }
 0x3c7   : > { %v1384_v43 = vmax.f32 %v1360_v40, 0.0 }
 0x3c8   : > { %v1455_v58 = vld [vmem:[%s2383_s19 + $0x70] sm:$0xff] (%p1894_p5) }
 0x3c9   : > { %1404 = vst [vmem:[%s2383_s19 + $0x98] sm:$0xff] %v1384_v43 }
 0x3ca   : > { %1456 = vst [vmem:[%s2449_s21 + $0xc0] sm:$0xff] (%p1894_p5), %v1455_v58 }
 0x3cc   : > { %v1362_v14 = vpop.f32.mrf.mxu1 }
 0x3d0   : > { %1411 = sbr.rel (!%p1894_p5) target bundleno = 981 (0x3d5), region = 78  ;;  %v1465_v52 = vld [vmem:[%s2383_s19 + $0x98] sm:$0xff] (%p1894_p5) }
 0x3d1   : > { %1466 = vst [vmem:[%s2449_s21 + $0x110] sm:$0xff] (%p1894_p5), %v1465_v52 }
 0x3d4   : > { %v1363_v45 = vpop.f32.mrf.mxu1 }
 0x3d5 PF: > { %p14_p11 = scmp.ge.s32.totalorder %s1882_s28, 4   ;;  %s2508_s24 = smov %s1817_s25 }
 0x3d6   : > { %s2509_s25 = smov %s1892_s8  ;;  %s2510_s26 = smov %s1882_s28 }
 0x3d7   :  { %16 = sbr.rel (!%p14_p11) target bundleno = 2 (0x2), region = 141 }

</bundles_post_ra>
